<compile_context>
chip_gen: v7x
topology: tpu7x:2x2x1
jax: 0.10.0
libtpu: 0.0.40
codegen_flags: <defaults>
</compile_context>

<pallas_src>
import functools

import jax
import jax.numpy as jnp
from jax import lax
from jax.experimental import pallas as pl
from jax.experimental.pallas import tpu as pltpu


def attentive_pooling_kernel(x_ref, w1_ref, b1_ref, w2_ref, o_ref, *,
                             approx_reciprocal):
    """One grid step = one batch element.

    x_ref : (1, T, D)  activations for batch b (f32 or bf16)
    w1_ref: (D, D)     attention Linear(dim, dim) weight (x @ w1 layout)
    b1_ref: (1, D)     its bias
    w2_ref: (1, D)     Linear(dim, 1) weight row
    o_ref : (1, 1, D)  pooled output row for batch b
    """
    x = x_ref[0]                                                  # (T, D)

    # Attention MLP: (T, D) @ (D, D) on the MXU, accumulate in f32.
    h = jnp.tanh(
        jnp.dot(x, w1_ref[...], preferred_element_type=jnp.float32)
        + b1_ref[...])                                            # (T, D) f32

    # Lane-dense scores (1, T): contract D of w2 (1, D) against D of h (T, D).
    # Time lives in the lane dimension, so the softmax reductions below are
    # cheap lane reduces instead of (T, 1) sublane-sparse ops.
    s = lax.dot_general(w2_ref[...].astype(jnp.float32), h,
                        (((1,), (1,)), ((), ())),
                        preferred_element_type=jnp.float32)       # (1, T)
    # NOTE: Linear(dim,1).bias is intentionally omitted — softmax is shift
    # invariant, so it cancels exactly (verified against the reference).

    m = jnp.max(s, axis=-1, keepdims=True)                        # (1, 1)
    e = jnp.exp(s - m)                                            # (1, T)
    denom = jnp.sum(e, axis=-1, keepdims=True)                    # (1, 1)
    # approx=True uses the EUP vrcp slot (free) but loosens accuracy beyond
    # the 1e-4 validation at this scale; keep exact by default.
    inv = pl.reciprocal(denom, approx=approx_reciprocal)
    wgt = e * inv                                                 # (1, T) softmax

    # Attention-weighted pooling on the MXU: (1, T) @ (T, D).
    pooled = jnp.dot(wgt.astype(x.dtype), x,
                     preferred_element_type=jnp.float32)          # (1, D)
    o_ref[0] = pooled.astype(o_ref.dtype)


def attentive_pooling(x, p, *,
                      matmul_dtype=jnp.float32,
                      approx_reciprocal=False,
                      vmem_limit_bytes=32 * 1024 * 1024):
    """x: (B, T, D). Returns (B, D) attentive-pooled features.

    matmul_dtype=jnp.bfloat16 halves activation/weight DMA and uses the native
    bf16 MXU path on v6e/v7x (accumulation stays f32); left at f32 here so the
    1e-4 validation holds.
    """
    B, T, D = x.shape
    out_dtype = x.dtype

    # Tiling contract / VMEM budget (documented + asserted, per review).
    assert T % 8 == 0, "T must be a multiple of 8 for sublane-aligned (T, D) tiles"
    itemsize = jnp.dtype(matmul_dtype).itemsize
    working_set = (
        2 * (T * D * itemsize + D * 4)          # double-buffered x tile + out tile
        + (D * D * itemsize + 2 * D * 4)        # resident w1, b1, w2
        + 4 * T * D * 4                         # h / scores / temporaries headroom
    )
    assert working_set <= vmem_limit_bytes, (
        f"per-step working set {working_set}B exceeds vmem_limit_bytes")

    w1 = p["w1"]
    if matmul_dtype != x.dtype:
        x = x.astype(matmul_dtype)
        w1 = w1.astype(matmul_dtype)

    kernel = functools.partial(attentive_pooling_kernel,
                               approx_reciprocal=approx_reciprocal)

    flops = B * (2 * T * D * D + 4 * T * D)            # attn matmul + score + pool
    transcendentals = B * T * D + B * T                 # tanh + exp
    bytes_accessed = itemsize * (B * T * D + D * D) + 4 * (2 * D + B * D)

    out = pl.pallas_call(
        kernel,
        out_shape=jax.ShapeDtypeStruct((B, 1, D), out_dtype),
        grid=(B,),
        in_specs=[
            # x: one batch slab per grid step (double-buffered by Pallas).
            pl.BlockSpec((1, T, D), lambda b: (b, 0, 0)),
            # Weights: constant index_map -> fetched once, VMEM-resident.
            pl.BlockSpec((D, D), lambda b: (0, 0)),
            pl.BlockSpec((1, D), lambda b: (0, 0)),
            pl.BlockSpec((1, D), lambda b: (0, 0)),
        ],
        out_specs=pl.BlockSpec((1, 1, D), lambda b: (b, 0, 0)),
        compiler_params=pltpu.CompilerParams(
            dimension_semantics=("parallel",),          # dual-TC sharding on v7x
            vmem_limit_bytes=vmem_limit_bytes,
        ),
        cost_estimate=pl.CostEstimate(flops=flops,
                                      transcendentals=transcendentals,
                                      bytes_accessed=bytes_accessed),
    )(x, w1, p["b1"], p["w2"])
    return out.reshape(B, D)


def make_params(key, dim):
    """Deterministic synthetic parameters (PyTorch Linear shapes -> kernel layout)."""
    ks = jax.random.split(key, 4)
    n = lambda k, s, scale=0.1: (scale * jax.random.normal(k, s)).astype(jnp.float32)

    w1_pt = n(ks[0], (dim, dim))        # nn.Linear(dim, dim).weight
    b1 = n(ks[1], (dim,))               # nn.Linear(dim, dim).bias
    w2_pt = n(ks[2], (1, dim))          # nn.Linear(dim, 1).weight
    b2 = n(ks[3], (1,))                 # nn.Linear(dim, 1).bias

    return {
        "w1": w1_pt.T,                  # PyTorch Linear computes x @ W.T + b
        "b1": b1[None, :],              # (1, D)
        "w2": w2_pt,                    # (1, D) row
        "b2": b2[None, :],              # (1, 1) — used by the reference only
    }


def reference(x, p):
    """Pure-JAX reference mirroring the PyTorch forward (keeps the b2 bias)."""
    h = jnp.tanh(x @ p["w1"] + p["b1"])                               # (B, T, D)
    s = jnp.einsum("btd,od->bto", h, p["w2"]) + p["b2"][0, 0]         # (B, T, 1)
    w = jax.nn.softmax(s, axis=1)                                     # softmax over time
    return jnp.sum(x * w, axis=1)                                     # bmm(x^T, w).squeeze(-1)


if __name__ == "__main__":
    # AttentivePooling(dim=32) on a (batch=2, seq=16, dim=32) input.
    B, T, D = 2, 16, 32

    key = jax.random.PRNGKey(0)
    kx, kp = jax.random.split(key)
    x = jax.random.normal(kx, (B, T, D), dtype=jnp.float32)
    params = make_params(kp, D)

    out = jax.block_until_ready(attentive_pooling(x, params))
    ref = jax.block_until_ready(reference(x, params))

    assert out.shape == (B, D)
    assert jnp.allclose(out, ref, rtol=1e-4, atol=1e-4), "mismatch vs reference"
    print("KERNEL_OK")
</pallas_src>

<mosaic_0001>
module attributes {stable_mosaic.version = 11 : i64} {
  func.func @attentive_pooling_kernel(%arg0: i32, %arg1: memref<1x16x32xf32, #tpu.memory_space<vmem>>, %arg2: memref<32x32xf32, #tpu.memory_space<vmem>>, %arg3: memref<1x32xf32, #tpu.memory_space<vmem>>, %arg4: memref<1x32xf32, #tpu.memory_space<vmem>>, %arg5: memref<1x1x32xf32, #tpu.memory_space<vmem>>) attributes {dimension_semantics = [#tpu.dimension_semantics<parallel>], iteration_bounds = array<i64: 2>, scalar_prefetch = 0 : i64, scratch_operands = 0 : i64, tpu.core_type = #tpu.core_type<tc>, window_params = [{transform_indices = @transform_0, window_bounds = array<i64: 1, 16, 32>}, {pipeline_mode = #tpu.pipeline_mode<synchronous>, transform_indices = @transform_1, window_bounds = array<i64: 32, 32>}, {pipeline_mode = #tpu.pipeline_mode<synchronous>, transform_indices = @transform_2, window_bounds = array<i64: 1, 32>}, {pipeline_mode = #tpu.pipeline_mode<synchronous>, transform_indices = @transform_3, window_bounds = array<i64: 1, 32>}, {transform_indices = @transform_4, window_bounds = array<i64: 1, 1, 32>}]} {
    %c0 = arith.constant 0 : index
    %c0_0 = arith.constant 0 : index
    %c0_1 = arith.constant 0 : index
    %0 = vector.load %arg1[%c0, %c0_0, %c0_1] : memref<1x16x32xf32, #tpu.memory_space<vmem>>, vector<1x16x32xf32>
    %1 = vector.shape_cast %0 : vector<1x16x32xf32> to vector<16x32xf32>
    %c0_2 = arith.constant 0 : index
    %c0_3 = arith.constant 0 : index
    %2 = vector.load %arg2[%c0_2, %c0_3] : memref<32x32xf32, #tpu.memory_space<vmem>>, vector<32x32xf32>
    %cst = arith.constant dense<0.000000e+00> : vector<16x32xf32>
    %3 = tpu.matmul %1, %2, %cst {dimension_numbers = #tpu.dot_dimension_numbers<[1], [0], [0], [1], [0, 0, 1, 1], [], []>} : vector<16x32xf32>, vector<32x32xf32>, vector<16x32xf32> -> vector<16x32xf32>
    %c0_4 = arith.constant 0 : index
    %c0_5 = arith.constant 0 : index
    %4 = vector.load %arg3[%c0_4, %c0_5] : memref<1x32xf32, #tpu.memory_space<vmem>>, vector<1x32xf32>
    %5 = vector.broadcast %4 : vector<1x32xf32> to vector<16x32xf32>
    %6 = arith.addf %3, %5 : vector<16x32xf32>
    %7 = math.tanh %6 : vector<16x32xf32>
    %c0_6 = arith.constant 0 : index
    %c0_7 = arith.constant 0 : index
    %8 = vector.load %arg4[%c0_6, %c0_7] : memref<1x32xf32, #tpu.memory_space<vmem>>, vector<1x32xf32>
    %cst_8 = arith.constant dense<0.000000e+00> : vector<1x16xf32>
    %9 = tpu.matmul %8, %7, %cst_8 {dimension_numbers = #tpu.dot_dimension_numbers<[1], [1], [0], [0], [0, 0, 1, 0], [], []>} : vector<1x32xf32>, vector<16x32xf32>, vector<1x16xf32> -> vector<1x16xf32>
    %cst_9 = arith.constant dense<0xFF800000> : vector<1xf32>
    %10 = vector.multi_reduction <maximumf>, %9, %cst_9 [1] : vector<1x16xf32> to vector<1xf32>
    %11 = vector.shape_cast %10 : vector<1xf32> to vector<1x1xf32>
    %12 = vector.broadcast %11 : vector<1x1xf32> to vector<1x16xf32>
    %13 = arith.subf %9, %12 : vector<1x16xf32>
    %14 = math.exp %13 : vector<1x16xf32>
    %cst_10 = arith.constant dense<0.000000e+00> : vector<1xf32>
    %15 = vector.multi_reduction <add>, %14, %cst_10 [1] : vector<1x16xf32> to vector<1xf32>
    %16 = vector.shape_cast %15 : vector<1xf32> to vector<1x1xf32>
    %17 = tpu.reciprocal %16 : vector<1x1xf32> -> vector<1x1xf32>
    %18 = vector.broadcast %17 : vector<1x1xf32> to vector<1x16xf32>
    %19 = arith.mulf %14, %18 : vector<1x16xf32>
    %cst_11 = arith.constant dense<0.000000e+00> : vector<1x32xf32>
    %20 = tpu.matmul %19, %1, %cst_11 {dimension_numbers = #tpu.dot_dimension_numbers<[1], [0], [0], [1], [0, 0, 1, 1], [], []>} : vector<1x16xf32>, vector<16x32xf32>, vector<1x32xf32> -> vector<1x32xf32>
    %c0_12 = arith.constant 0 : index
    %c0_13 = arith.constant 0 : index
    %c0_14 = arith.constant 0 : index
    %21 = vector.load %arg5[%c0_12, %c0_13, %c0_14] : memref<1x1x32xf32, #tpu.memory_space<vmem>>, vector<1x1x32xf32>
    %22 = vector.shape_cast %21 : vector<1x1x32xf32> to vector<1x32xf32>
    %23 = vector.shape_cast %20 : vector<1x32xf32> to vector<1x1x32xf32>
    tpu.vector_store %arg5[%c0_12, %c0_13, %c0_14], %23 {strides = array<i32>} : memref<1x1x32xf32, #tpu.memory_space<vmem>>, vector<1x1x32xf32>,
    return
  }
  func.func @transform_0(%arg0: i32) -> (i32, i32, i32) {
    %c0_i32 = arith.constant 0 : i32
    %c0_i32_0 = arith.constant 0 : i32
    %c0_i32_1 = arith.constant 0 : i32
    return %arg0, %c0_i32, %c0_i32_0 : i32, i32, i32
  }
  func.func @transform_1(%arg0: i32) -> (i32, i32) {
    %c0_i32 = arith.constant 0 : i32
    %c0_i32_0 = arith.constant 0 : i32
    %c0_i32_1 = arith.constant 0 : i32
    return %c0_i32, %c0_i32_0 : i32, i32
  }
  func.func @transform_2(%arg0: i32) -> (i32, i32) {
    %c0_i32 = arith.constant 0 : i32
    %c0_i32_0 = arith.constant 0 : i32
    %c0_i32_1 = arith.constant 0 : i32
    return %c0_i32, %c0_i32_0 : i32, i32
  }
  func.func @transform_3(%arg0: i32) -> (i32, i32) {
    %c0_i32 = arith.constant 0 : i32
    %c0_i32_0 = arith.constant 0 : i32
    %c0_i32_1 = arith.constant 0 : i32
    return %c0_i32, %c0_i32_0 : i32, i32
  }
  func.func @transform_4(%arg0: i32) -> (i32, i32, i32) {
    %c0_i32 = arith.constant 0 : i32
    %c0_i32_0 = arith.constant 0 : i32
    %c0_i32_1 = arith.constant 0 : i32
    return %arg0, %c0_i32, %c0_i32_0 : i32, i32, i32
  }
}

</mosaic_0001>

<bundles_post_ra>
// kernel: tpu_custom_call.1
= control target key start
LH: loop header
LB: loop body
LE: loop exit
PB: predicated region body
PF: predicated region fallthrough
CT: control target
= control target key end

     0   :  { %9 = vsyncpa [#allocation3], 0  ;;  %s1107_s0 = inlined_call_operand.hbm [shape: f32[2,16,32], index: 0, kind: input, shape index: {}]   ;;  %s1108_s1 = inlined_call_operand.hbm [shape: f32[32,32], index: 1, kind: input, shape index: {}]   ;;  %s1109_s2 = inlined_call_operand.vmem [shape: f32[1,32], index: 2, kind: input, shape index: {}]   ;;  %s1110_s3 = inlined_call_operand.vmem [shape: f32[1,32], index: 3, kind: input, shape index: {}]   ;;  %s1111_s4 = inlined_call_operand.hbm [shape: f32[2,1,32], index: 4, kind: output, shape index: {}]  }
   0x1   :  { %11 = vsyncpa [#allocation3 + $0x1], 0 }
   0x2   :  { %12 = vsyncpa [#allocation6], 0 }
   0x3   :  { %13 = vsyncpa [#allocation4], 0 }
   0x4   :  { %15 = vsyncpa [#allocation4 + $0x1], 0  ;;  %s890_s15 = smov 0   ;;  %s892_s16 = smov 0  }
   0x5   :  { %s894_s17 = smov 0   ;;  %s896_s18 = smov 0  }
   0x6 LB: > { %s911_s19 = sadd.s32 4294967295, %s855_s18   ;;  %s584_s20 = sadd.s32 4294967294, %s855_s18   ;;  %s855_s18 = sphi %s896_s18, %s1131_s18   ;;  %s851_s17 = sphi %s894_s17, %s1130_s17   ;;  %s847_s16 = sphi %s892_s16, %s1129_s16   ;;  %s843_s15 = sphi %s890_s15, %s1128_s15  }
   0x7   : > { %p41_p0 = scmp.ne.s32.totalorder %s847_s16, %s843_s15  ;;  %p1112_p1 = scmp.eq.s32.totalorder %s911_s19, 0 }
   0x8   : > { %p134_p3 = scmp.eq.s32.totalorder %s584_s20, 1  ;;  %p585_p5 = scmp.ge.s32.totalorder %s855_s18, 1 }
   0x9   : > { %p920_p4 = por %p1112_p1, %p41_p0  ;;  %p141_p7 = scmp.lt.s32.totalorder %s855_s18, 3 }
   0xa   : > { %p925_p6 = por %p134_p3, %p41_p0  ;;  %s857_s24 = smov [#allocation5]  }
   0xb   : > { %s1115_s21 = scalar_select %p920_p4, 1, 0 }
   0xc   : > { %s1116_s22 = scalar_select %p925_p6, 1, 0 }
   0xd   : > { %p930_p8 = pnand %p585_p5, %p141_p7  ;;  %s153_s25 = sshll.u32 %s857_s24, 4  ;;  %s934_s25 = int_to_ptr.vmem [resolvable:$true] %s153_s25 }
   0xe   : > { %s946_s27 = sadd.s32 1, %s855_s18   ;;  %s28_s28 = sadd.s32 1, %s851_s17 }
   0xf   : > { %s1117_s23 = scalar_select %p930_p8, 1, 0 }
  0x10   : > { %p665_p9 = pneg %p930_p8  ;;  %s25_s29 = ssub.s32 %s855_s18, %s946_s27 }
  0x11   : > { %s727_s6 = scalar_lea.hbm %s1108_s1, 512 }
  0x12   : > { %p941_p11 = pnand %p665_p9, %p1112_p1  ;;  %p728_p12 = scmp.ne.s32.totalorder %s1108_s1, %s727_s6 }
  0x13   : > { %p734_p5 = scmp.lt.u32.totalorder %s727_s6, %s1108_s1 }
  0x14   : > { %p729_p13 = pneg %p941_p11 }
  0x16   : > { %p730_p0 = pnand %p729_p13, %p728_p12 }
  0x18   : > { %p731_p3 = pneg %p730_p0 }
  0x1a   : > { %p736_p7 = pnand %p734_p5, %p731_p3 }
  0x1c   : > { %739 = shalt.err (!%p736_p7)
}
  0x1d   : > { %s740_s11 = scalar_lea.vmem %s934_s25, 512  ;;  %p748_p2 = scmp.lt.s32.totalorder %s934_s25, %s934_s25 }
  0x1e   : > { %p741_p9 = scmp.ne.s32.totalorder %s934_s25, %s740_s11  ;;  %p749_p6 = scmp.lt.s32.totalorder %s740_s11, %s740_s11 }
  0x20   : > { %p743_p10 = pnand %p741_p9, %p729_p13  ;;  %p750_p4 = por %p749_p6, %p748_p2 }
  0x22   : > { %p744_p1 = pneg %p743_p10 }
  0x24   : > { %p751_p8 = pnand %p750_p4, %p744_p1 }
  0x26   : > { %754 = shalt.err (!%p751_p8)
}
  0x27   : > { %s858_s12 = smov 128   ;;  %s859_s13 = smov 8  }
  0x28   : > { %668 = dma.hbm_to_vmem [thread:$0]  (!%p941_p11), %s1108_s1, 512, %s934_s25, [#allocation6], %s858_s12, %s858_s12, %s859_s13  }
  0x29   : > { %p26_p1 = scmp.eq.s32.totalorder %s25_s29, 0  ;;  %p35_p2 = scmp.ne.s32.totalorder %s851_s17, %s847_s16 }
  0x2a   : > { %p36_p4 = scmp.eq.s32.totalorder %s855_s18, 0  ;;  %p678_p6 = scmp.lt.s32.totalorder %s855_s18, 2 }
  0x2b   : > { %s980_s24 = scalar_select %p26_p1, %s851_s17, %s28_s28  }
  0x2c   : > { %p37_p8 = por %p36_p4, %p35_p2  ;;  %p1119_p10 = scmp.eq.s32.totalorder %s911_s19, 1 }
  0x2d   : > { %s173_s26 = sand.u32 1, %s851_s17   ;;  %s604_s5 = sshll.u32 %s855_s18, 8 }
  0x2e   : > { %p984_p12 = por %p1119_p10, %p35_p2  ;;  %s588_s6 = sshll.u32 %s173_s26, 4 }
  0x2f   : > { %s993_s9 = scalar_lea.hbm %s1107_s0, %s604_s5  ;;  %s177_s25 = scalar_lea.vmem [#allocation2], %s588_s6 }
  0x30   : > { %s184_s28 = sshll.u32 %s177_s25, 4  ;;  %p995_p11 = pnand %p678_p6, %p37_p8  ;;  %s999_s28 = int_to_ptr.vmem [resolvable:$true] %s184_s28 }
  0x31   : > { %s1001_s10 = scalar_lea.sflag [#allocation3], %s173_s26  ;;  %s755_s11 = scalar_lea.hbm %s993_s9, 256 }
  0x32   : > { %p756_p13 = scmp.ne.s32.totalorder %s993_s9, %s755_s11  ;;  %p757_p0 = pneg %p995_p11 }
  0x33   : > { %s760_s5 = scalar_lea.hbm %s1107_s0, 512  ;;  %p761_p7 = scmp.lt.u32.totalorder %s993_s9, %s1107_s0 }
  0x34   : > { %p758_p3 = pnand %p757_p0, %p756_p13  ;;  %p762_p9 = scmp.lt.u32.totalorder %s760_s5, %s755_s11 }
  0x35   : > { %p764_p2 = scmp.lt.u32.totalorder %s755_s11, %s993_s9 }
  0x36   : > { %p759_p5 = pneg %p758_p3  ;;  %p763_p1 = por %p762_p9, %p761_p7 }
  0x38   : > { %p765_p4 = por %p764_p2, %p763_p1 }
  0x3a   : > { %p766_p6 = pnand %p765_p4, %p759_p5 }
  0x3c   : > { %769 = shalt.err (!%p766_p6)
}
  0x3d   : > { %s770_s26 = scalar_lea.vmem %s999_s28, 256  ;;  %s860_s8 = smov [#allocation2]  }
  0x3e   : > { %p771_p8 = scmp.ne.s32.totalorder %s999_s28, %s770_s26  ;;  %s775_s25 = sshll.u32 %s860_s8, 4  ;;  %s776_s25 = int_to_ptr.vmem [resolvable:$false] %s775_s25 }
  0x3f   : > { %s777_s14 = scalar_lea.vmem %s776_s25, 512  ;;  %p778_p3 = scmp.lt.s32.totalorder %s999_s28, %s776_s25 }
  0x40   : > { %p773_p10 = pnand %p771_p8, %p757_p0  ;;  %p779_p7 = scmp.lt.s32.totalorder %s777_s14, %s770_s26 }
  0x42   : > { %p774_p13 = pneg %p773_p10  ;;  %p780_p9 = por %p779_p7, %p778_p3 }
  0x44   : > { %p781_p1 = pnand %p780_p9, %p774_p13 }
  0x46   : > { %784 = shalt.err (!%p781_p1)
}
  0x47   : > { %672 = dma.hbm_to_vmem [thread:$0]  (!%p995_p11), %s993_s9, 256, %s999_s28, %s1001_s10, %s858_s12, %s858_s12, %s859_s13  }
  0x48   : > { %p1122_p0 = scmp.ne.s32.totalorder %s1117_s23, 0 }
  0x49   : > { %s1035_s11 = sand.u32 (!%p1122_p0), 1, %s847_s16   ;;  %p1123_p5 = scmp.ne.s32.totalorder (!%p1122_p0), %s1115_s21, 0 }
  0x4a   : > { %196 = sbr.rel (%p1122_p0) target bundleno = 1083 (0x43b), region = 36  ;;  %s592_s20 = sshll.u32 (!%p1122_p0), %s1035_s11, 4 }
  0x4b   : > { %s199_s5 = scalar_lea.sflag (!%p1122_p0), [#allocation3], %s1035_s11  ;;  %s202_s6 = scalar_lea.vmem (!%p1122_p0), [#allocation2], %s592_s20 }
  0x51   : > { %830 = dma.done.wait (%p1123_p5), %s199_s5, 256  }
  0x52   : > { %832 = vsyncadd (%p1123_p5), %s199_s5, 4294967040  ;;  %p1124_p2 = scmp.eq.s32.totalorder %s911_s19, 0 }
  0x54   : > { %834 = dma.done.wait (%p1124_p2), [#allocation6], 512   ;;  %p1125_p11 = pmov %p1124_p2 }
  0x55   : > { %vm243_vm0 = vcmask 261120   ;;  %v232_v0 = vld [vmem:[#allocation5] sm:$0xff]  ;;  %v233_v1 = vld [vmem:[#allocation5 + $0x8] sm:$0xff]  ;;  %v234_v2 = vld [vmem:[#allocation5 + $0x10] sm:$0xff]  ;;  %v861_v9 = vmov 0.0|0.0   ;;  %vm862_vm1 = vmmov 0  }
  0x56   : > { %836 = vsyncadd (%p1125_p11), [#allocation6], 4294966784  ;;  %v642_v3 = vpack.c.bf16 %v233_v1, %v232_v0  ;;  %v235_v4 = vld [vmem:[#allocation5 + $0x18] sm:$0xff]  ;;  %v230_v5 = vld [vmem:[%s202_s6] sm:$0xff]  ;;  %650 = vmatprep.subr.bf16.mxu1 %v861_v9  ;;  %v863_v10 = vmov 0.0   ;;  %vm407_vm3 = vcmask 122880  }
  0x57   : > { %v231_v6 = vld [vmem:[%s202_s6 + $0x8] sm:$0xff]  ;;  %v646_v7 = vpack.c.bf16 %v235_v4, %v234_v2  ;;  %625 = vmatprep.mubr.msk.f32.mxu0 %vm243_vm0, %v230_v5  ;;  %632 = vmatprep.mubr.msk.f32.mxu1 %vm862_vm1, %v863_v10  ;;  %v594_v11 = vld [vmem:[%s1109_s2] ss:$0 sm:$0xff]  ;;  %vm652_vm2 = vmpackc.low %vm243_vm0, %vm243_vm0  ;;  %vm419_vm4 = vcmask 130048   ;;  %s601_s9 = sshll.u32 %s911_s19, 4  ;;  %s229_s28 = scalar_lea.vmem [#allocation7], %s1035_s11 }
  0x58   : > { %v655_v8 = vpack.c.bf16 %v231_v6, %v230_v5  ;;  %643 = vmatprep.subr.bf16.mxu0 %v642_v3  ;;  %v327_v19 = vld [vmem:[%s1110_s3] sm:$0x1]  ;;  %s508_s29 = sshll.u32 %s229_s28, 4  ;;  %vm493_vm5 = vcmask 253952   ;;  %s1063_s26 = scalar_lea.hbm %s1111_s4, %s601_s9  ;;  %s1065_s29 = int_to_ptr.vmem [resolvable:$true] %s508_s29 }
  0x59   : > { %645 = vmatpush3.bf16.msra.mxu0 %v642_v3  ;;  %s496_s8 = scalar_lea.sflag [#allocation4], %s1035_s11  ;;  %s785_s25 = scalar_lea.vmem %s1065_s29, 16 }
  0x5a   : > { %647 = vmatprep.subr.bf16.mxu0 %v646_v7  ;;  %p786_p4 = scmp.ne.s32.totalorder %s1065_s29, %s785_s25  ;;  %s864_s19 = smov [#allocation7]  }
  0x5b   : > { %s789_s14 = sshll.u32 %s864_s19, 4  ;;  %s790_s14 = int_to_ptr.vmem [resolvable:$false] %s789_s14 }
  0x5c   : > { %p787_p6 = pnand %p786_p4, %p984_p12  ;;  %s791_s20 = scalar_lea.vmem %s790_s14, 32 }
  0x5d   : > { %649 = vmatpush3.bf16.msra.mxu0 %v646_v7  ;;  %p792_p10 = scmp.lt.s32.totalorder %s1065_s29, %s790_s14  ;;  %p793_p13 = scmp.lt.s32.totalorder %s791_s20, %s785_s25 }
  0x5e   : > { %654 = vmatprep.subr.bf16.mxu0 %v861_v9  ;;  %p788_p8 = pneg %p787_p6 }
  0x5f   : > { %p794_p3 = por %p793_p13, %p792_p10 }
  0x60   : > { %626 = vmatmul.mubr.msk.f32.vlgmr.msra.gmra.mrb[0].mxu0 %vm243_vm0, %v231_v6 }
  0x61   : > { %656 = vmatpush3.bf16.msra.mxu0 %v655_v8  ;;  %639 = vmatprep.mubr.msk.f32.mxu0 %vm862_vm1, %v863_v10  ;;  %p795_p7 = pnand %p794_p3, %p788_p8 }
 0x133   : > { %v627_v12 = vpop.f32.mrb[0].mxu0 }
 0x134   : > { %v322_v13 = vadd.f32 %v627_v12, %v594_v11  ;;  %v316_v14 = vpop.f32.mrb[1].mxu0 }
 0x135   : > { %v317_v15 = vadd.f32 %v594_v11, %v316_v14 }
 0x136   : > { %719 = vtanh.f32 %v322_v13 }
 0x137   : > { %721 = vtanh.f32 %v317_v15 }
 0x140   : > { %v720_v16 = vpop.eup %719 }
 0x141   : > { %v722_v17 = vpop.eup %721 }
 0x142   : > { %v651_v18 = vpack.c.bf16 %v720_v16, %v722_v17 }
 0x144   : > { %653 = vmatpush3.bf16.xpose.msk.msra.mxu1 %vm652_vm2, %v651_v18 }
 0x14b   : > { %633 = vmatmul.mubr.msk.f32.vlgmr.msra.gmra.mrb[0].mxu1 %vm243_vm0, %v327_v19 }
 0x21e   : > { %v403_v20 = vpop.f32.mrb[0].mxu1 }
 0x21f   : > { %v634_v21 = vpop.f32.mrb[1].mxu1  ;;  %v408_v22 = vsel %vm407_vm3, %v403_v20, -inf }
 0x220   : > { %409 = vmax.xlane.f32.xlu0 %v408_v22 }
 0x2ad   : > { %v410_v23 = vpop.xlane.xlu0 %409 }
 0x2ae   : > { %v411_v24 = vsub.f32 %v403_v20, %v410_v23 }
 0x2b0   : > { %v412_v25 = vmul.f32 1.442695, %v411_v24 }
 0x2b2   : > { %723 = vpow2.f32 %v412_v25 }
 0x2bc   : > { %v724_v26 = vpop.eup %723 }
 0x2bd   : > { %v414_v27 = vsel %vm407_vm3, %v724_v26, 0.0 }
 0x2be   : > { %415 = vadd.xlane.f32.xlu0 %v414_v27 }
 0x34b   : > { %v416_v28 = vpop.xlane.xlu0 %415 }
 0x34c   : > { %725 = vrcp.f32 %v416_v28 }
 0x356   : > { %v726_v29 = vpop.eup %725 }
 0x357   : > { %v418_v30 = vmul.f32 %v726_v29, %v724_v26 }
 0x359   : > { %640 = vmatmul.mubr.msk.f32.vlgmr.msra.gmra.mrb[2].mxu0 %vm419_vm4, %v418_v30 }
 0x42c   : > { %v489_v31 = vpop.f32.mrb[2].mxu0 }
 0x42d   : > { %494 = vst.msk [vmem:[%s229_s28] sm:$0x1] %vm493_vm5, %v489_v31  ;;  %v641_v32 = vpop.f32.mrb[3].mxu0 }
 0x42e   : > { %798 = shalt.err (!%p795_p7)
}
 0x42f   : > { %s799_s11 = scalar_lea.hbm %s1063_s26, 16  ;;  %s803_s21 = scalar_lea.hbm %s1111_s4, 32 }
 0x430   : > { %p800_p9 = scmp.ne.s32.totalorder %s1063_s26, %s799_s11  ;;  %p804_p5 = scmp.lt.u32.totalorder %s1063_s26, %s1111_s4 }
 0x431   : > { %p805_p2 = scmp.lt.u32.totalorder %s803_s21, %s799_s11  ;;  %p807_p4 = scmp.lt.u32.totalorder %s799_s11, %s1063_s26 }
 0x432   : > { %p801_p1 = pnand %p800_p9, %p984_p12 }
 0x433   : > { %p806_p11 = por %p805_p2, %p804_p5 }
 0x434   : > { %p802_p0 = pneg %p801_p1 }
 0x435   : > { %p808_p6 = por %p807_p4, %p806_p11 }
 0x437   : > { %p809_p8 = pnand %p808_p6, %p802_p0 }
 0x439   : > { %812 = shalt.err (!%p809_p8)
}
 0x43a   : > { %663 = dma.vmem_to_hbm [thread:$0]  (%p984_p12), %s1065_s29, 16, %s1063_s26, %s496_s8  }
 0x43b PF: > { %s520_s13 = sand.u32 1, %s843_s15   ;;  %p1126_p10 = scmp.ne.s32.totalorder %s1116_s22, 0 }
 0x43c   : > { %p1127_p13 = scmp.ge.s32.totalorder %s855_s18, 2  ;;  %s521_s9 = scalar_lea.sflag [#allocation4], %s520_s13 }
 0x43e   : > { %p674_p3 = pnand %p1127_p13, %p1126_p10 }
 0x440   : > { %838 = dma.done.wait (!%p674_p3), %s521_s9, 16  }
 0x441   : > { %840 = vsyncadd (!%p674_p3), %s521_s9, 4294967280  ;;  %p18_p7 = scmp.ge.s32.totalorder %s946_s27, 4   ;;  %s1128_s15 = smov %s847_s16 }
 0x442   : > { %s1129_s16 = smov %s851_s17  ;;  %s1130_s17 = smov %s980_s24 }
 0x443   : > { %s1131_s18 = smov %s946_s27  ;;  %20 = sbr.rel (!%p18_p7) target bundleno = 6 (0x6), region = 85 }
 0x44a   :  { %525 = vsyncpa [#allocation3], 1 }
 0x44b   :  { %527 = vsyncpa [#allocation3 + $0x1], 1 }
 0x44c   :  { %528 = vsyncpa [#allocation6], 1 }
 0x44d   :  { %529 = vsyncpa [#allocation4], 1 }
 0x44e   :  { %531 = vsyncpa [#allocation4 + $0x1], 1 }

</bundles_post_ra>
